<compile_context>
chip_gen: v7x
topology: tpu7x:2x2x1
jax: 0.10.0
libtpu: 0.0.40
codegen_flags: <defaults>
</compile_context>

<pallas_src>
import jax
import jax.numpy as jnp
from jax.experimental import pallas as pl


_LEAKY_SLOPE = 0.1  # matches nn.LeakyReLU(0.1) in the PyTorch module


def _leaky_relu(x, slope=_LEAKY_SLOPE):
    return jnp.where(x > 0, x, slope * x)


def _siamese_kernel(xa_ref, xp_ref, xn_ref,
                    w1_ref, b1_ref,
                    w2_ref, b2_ref,
                    w3_ref, b3_ref,
                    w4_ref, b4_ref,
                    oa_ref, op_ref, on_ref):
    """One invocation; everything VMEM-resident.

    xa/xp/xn : (B, D_in)  f32 anchor / positive / negative rows
    wK       : (D_{k-1}, D_k) bf16 weights with eval-BN scale folded in
    bK       : (1, D_k)   f32 effective bias (linear bias + BN shift)
    oa/op/on : (B, D_out) f32 L2-normalized embeddings
    """
    B = xa_ref.shape[0]

    # Fuse the three branches into one (3B, D_in) slab inside VMEM
    # (f32 concat keeps 8-row sublane alignment), then cast to bf16 once.
    x = jnp.concatenate([xa_ref[...], xp_ref[...], xn_ref[...]], axis=0)
    h = x.astype(w1_ref.dtype)

    def layer(h_lp, w_ref, b_ref, activate):
        z = jnp.dot(h_lp, w_ref[...], preferred_element_type=jnp.float32)
        z = z + b_ref[...]
        if activate:
            # compare/select in f32 (portable to v5e), cast to bf16 afterwards
            z = _leaky_relu(z)
        return z

    h = layer(h, w1_ref, b1_ref, True).astype(w2_ref.dtype)
    h = layer(h, w2_ref, b2_ref, True).astype(w3_ref.dtype)
    h = layer(h, w3_ref, b3_ref, True).astype(w4_ref.dtype)
    y = layer(h, w4_ref, b4_ref, False)               # bn4, no activation (f32)

    # F.normalize(y, p=2, dim=1): y / max(||y||, 1e-12)
    #   == y * rsqrt(max(sum(y^2), 1e-24))            (rsqrt -> EUP slot)
    ss = jnp.sum(y * y, axis=1, keepdims=True)
    y = y * jax.lax.rsqrt(jnp.maximum(ss, 1e-24))

    oa_ref[...] = y[:B].astype(oa_ref.dtype)
    op_ref[...] = y[B:2 * B].astype(op_ref.dtype)
    on_ref[...] = y[2 * B:].astype(on_ref.dtype)


def _fold_bn(b, gamma, beta, mean, var, eps=1e-5):
    """Fold BatchNorm1d (eval) following a Linear layer into scale/bias."""
    scale = gamma / jnp.sqrt(var + eps)
    bias = b * scale + beta - mean * scale
    return scale.reshape(1, -1), bias.reshape(1, -1)


def make_params(key, input_size, hidden_size):
    """Deterministic synthetic parameters matching the PyTorch module shapes."""
    dims = [(input_size, hidden_size),
            (hidden_size, hidden_size),
            (hidden_size, hidden_size // 2),
            (hidden_size // 2, hidden_size // 2)]
    params = []
    for (din, dout) in dims:
        key, kw, kb, kg, kbt, km, kv = jax.random.split(key, 7)
        w = jax.random.normal(kw, (din, dout), jnp.float32) * (1.0 / jnp.sqrt(din))
        b = jax.random.normal(kb, (dout,), jnp.float32) * 0.05
        gamma = 1.0 + 0.1 * jax.random.normal(kg, (dout,), jnp.float32)
        beta = 0.05 * jax.random.normal(kbt, (dout,), jnp.float32)
        mean = 0.1 * jax.random.normal(km, (dout,), jnp.float32)
        var = 1.0 + 0.1 * jax.random.uniform(kv, (dout,), jnp.float32)
        scale, bias = _fold_bn(b, gamma, beta, mean, var)
        params.append((w, scale, bias))
    return params


def prepare_kernel_params(params, weight_dtype=jnp.bfloat16):
    """One-time offline transform: fold the BN scale into W (columnwise) and
    cast W to bf16. No K padding — Mosaic handles K=112 in a single MXU pass."""
    prepped = []
    for (w, scale, bias) in params:
        w_eff = (w * scale).astype(weight_dtype)   # bn(linear(x)) == x@(W*s)+bias
        prepped.append((w_eff, bias.astype(jnp.float32)))
    return prepped


@jax.jit
def siamese_forward(anchor, positive, negative, kernel_params):
    """EnhancedSiameseNetwork.forward: returns (anchor_out, pos_out, neg_out).

    Gridless pallas_call: three inputs, three outputs, no wrapper-side XLA ops.
    """
    B = anchor.shape[0]
    d_out = kernel_params[-1][0].shape[1]

    flat_params = []
    for (w, b) in kernel_params:
        flat_params.extend([w, b])

    out_shape = tuple(jax.ShapeDtypeStruct((B, d_out), jnp.float32)
                      for _ in range(3))

    return pl.pallas_call(
        _siamese_kernel,
        out_shape=out_shape,
    )(anchor, positive, negative, *flat_params)


def _reference_forward(anchor, positive, negative, params):
    """Plain-JAX f32 reference (original, un-folded BN-eval semantics)."""
    def enc(x):
        h = x
        for idx, (w, s, c) in enumerate(params):
            z = h @ w * s + c
            h = _leaky_relu(z) if idx < 3 else z
        n = jnp.sqrt(jnp.sum(h * h, axis=1, keepdims=True))
        return h / jnp.maximum(n, 1e-12)
    return enc(anchor), enc(positive), enc(negative)


if __name__ == "__main__":
    # Small shapes consistent with the module: input_size matches the original
    # script (112); hidden_size kept small for the smoke test.
    input_size = 112
    hidden_size = 64          # embedding dim = hidden_size // 2 = 32
    batch = 8

    key = jax.random.PRNGKey(0)
    k_params, k_a, k_p, k_n = jax.random.split(key, 4)

    params = make_params(k_params, input_size, hidden_size)
    kernel_params = prepare_kernel_params(params)

    anchor = jax.random.normal(k_a, (batch, input_size), jnp.float32)
    positive = jax.random.normal(k_p, (batch, input_size), jnp.float32)
    negative = jax.random.normal(k_n, (batch, input_size), jnp.float32)

    a_out, p_out, n_out = siamese_forward(anchor, positive, negative,
                                          kernel_params)
    jax.block_until_ready((a_out, p_out, n_out))

    # Sanity check against the pure-JAX f32 reference. Tolerance loosened vs.
    # a pure-f32 kernel because weights/activations are bf16 (f32 accumulate);
    # outputs are L2-normalized so entries are O(1).
    a_ref, p_ref, n_ref = _reference_forward(anchor, positive, negative, params)
    for got, ref in ((a_out, a_ref), (p_out, p_ref), (n_out, n_ref)):
        assert got.shape == (batch, hidden_size // 2)
        assert jnp.max(jnp.abs(got - ref)) < 5e-2

    print("KERNEL_OK")
</pallas_src>

<mosaic_0001>
module attributes {stable_mosaic.version = 11 : i64} {
  func.func @_siamese_kernel(%arg0: memref<8x112xf32, #tpu.memory_space<vmem>>, %arg1: memref<8x112xf32, #tpu.memory_space<vmem>>, %arg2: memref<8x112xf32, #tpu.memory_space<vmem>>, %arg3: memref<112x64xbf16, #tpu.memory_space<vmem>>, %arg4: memref<1x64xf32, #tpu.memory_space<vmem>>, %arg5: memref<64x64xbf16, #tpu.memory_space<vmem>>, %arg6: memref<1x64xf32, #tpu.memory_space<vmem>>, %arg7: memref<64x32xbf16, #tpu.memory_space<vmem>>, %arg8: memref<1x32xf32, #tpu.memory_space<vmem>>, %arg9: memref<32x32xbf16, #tpu.memory_space<vmem>>, %arg10: memref<1x32xf32, #tpu.memory_space<vmem>>, %arg11: memref<8x32xf32, #tpu.memory_space<vmem>>, %arg12: memref<8x32xf32, #tpu.memory_space<vmem>>, %arg13: memref<8x32xf32, #tpu.memory_space<vmem>>) attributes {dimension_semantics = [], scalar_prefetch = 0 : i64, scratch_operands = 0 : i64, tpu.core_type = #tpu.core_type<tc>} {
    %c0 = arith.constant 0 : index
    %c0_0 = arith.constant 0 : index
    %0 = vector.load %arg0[%c0, %c0_0] : memref<8x112xf32, #tpu.memory_space<vmem>>, vector<8x112xf32>
    %c0_1 = arith.constant 0 : index
    %c0_2 = arith.constant 0 : index
    %1 = vector.load %arg1[%c0_1, %c0_2] : memref<8x112xf32, #tpu.memory_space<vmem>>, vector<8x112xf32>
    %c0_3 = arith.constant 0 : index
    %c0_4 = arith.constant 0 : index
    %2 = vector.load %arg2[%c0_3, %c0_4] : memref<8x112xf32, #tpu.memory_space<vmem>>, vector<8x112xf32>
    %3 = tpu.concatenate %0, %1, %2 in 0 : vector<8x112xf32>, vector<8x112xf32>, vector<8x112xf32> -> vector<24x112xf32>
    %4 = arith.truncf %3 : vector<24x112xf32> to vector<24x112xbf16>
    %c0_5 = arith.constant 0 : index
    %c0_6 = arith.constant 0 : index
    %5 = vector.load %arg3[%c0_5, %c0_6] : memref<112x64xbf16, #tpu.memory_space<vmem>>, vector<112x64xbf16>
    %cst = arith.constant dense<0.000000e+00> : vector<24x64xf32>
    %6 = tpu.matmul %4, %5, %cst {dimension_numbers = #tpu.dot_dimension_numbers<[1], [0], [0], [1], [0, 0, 1, 1], [], []>} : vector<24x112xbf16>, vector<112x64xbf16>, vector<24x64xf32> -> vector<24x64xf32>
    %c0_7 = arith.constant 0 : index
    %c0_8 = arith.constant 0 : index
    %7 = vector.load %arg4[%c0_7, %c0_8] : memref<1x64xf32, #tpu.memory_space<vmem>>, vector<1x64xf32>
    %8 = vector.broadcast %7 : vector<1x64xf32> to vector<24x64xf32>
    %9 = arith.addf %6, %8 : vector<24x64xf32>
    %cst_9 = arith.constant 0.000000e+00 : f32
    %10 = vector.broadcast %cst_9 : f32 to vector<24x64xf32>
    %11 = arith.cmpf ogt, %9, %10 : vector<24x64xf32>
    %cst_10 = arith.constant 1.000000e-01 : f32
    %12 = vector.broadcast %cst_10 : f32 to vector<24x64xf32>
    %13 = arith.mulf %12, %9 : vector<24x64xf32>
    %14 = arith.select %11, %9, %13 : vector<24x64xi1>, vector<24x64xf32>
    %15 = arith.truncf %14 : vector<24x64xf32> to vector<24x64xbf16>
    %c0_11 = arith.constant 0 : index
    %c0_12 = arith.constant 0 : index
    %16 = vector.load %arg5[%c0_11, %c0_12] : memref<64x64xbf16, #tpu.memory_space<vmem>>, vector<64x64xbf16>
    %cst_13 = arith.constant dense<0.000000e+00> : vector<24x64xf32>
    %17 = tpu.matmul %15, %16, %cst_13 {dimension_numbers = #tpu.dot_dimension_numbers<[1], [0], [0], [1], [0, 0, 1, 1], [], []>} : vector<24x64xbf16>, vector<64x64xbf16>, vector<24x64xf32> -> vector<24x64xf32>
    %c0_14 = arith.constant 0 : index
    %c0_15 = arith.constant 0 : index
    %18 = vector.load %arg6[%c0_14, %c0_15] : memref<1x64xf32, #tpu.memory_space<vmem>>, vector<1x64xf32>
    %19 = vector.broadcast %18 : vector<1x64xf32> to vector<24x64xf32>
    %20 = arith.addf %17, %19 : vector<24x64xf32>
    %cst_16 = arith.constant 0.000000e+00 : f32
    %21 = vector.broadcast %cst_16 : f32 to vector<24x64xf32>
    %22 = arith.cmpf ogt, %20, %21 : vector<24x64xf32>
    %cst_17 = arith.constant 1.000000e-01 : f32
    %23 = vector.broadcast %cst_17 : f32 to vector<24x64xf32>
    %24 = arith.mulf %23, %20 : vector<24x64xf32>
    %25 = arith.select %22, %20, %24 : vector<24x64xi1>, vector<24x64xf32>
    %26 = arith.truncf %25 : vector<24x64xf32> to vector<24x64xbf16>
    %c0_18 = arith.constant 0 : index
    %c0_19 = arith.constant 0 : index
    %27 = vector.load %arg7[%c0_18, %c0_19] : memref<64x32xbf16, #tpu.memory_space<vmem>>, vector<64x32xbf16>
    %cst_20 = arith.constant dense<0.000000e+00> : vector<24x32xf32>
    %28 = tpu.matmul %26, %27, %cst_20 {dimension_numbers = #tpu.dot_dimension_numbers<[1], [0], [0], [1], [0, 0, 1, 1], [], []>} : vector<24x64xbf16>, vector<64x32xbf16>, vector<24x32xf32> -> vector<24x32xf32>
    %c0_21 = arith.constant 0 : index
    %c0_22 = arith.constant 0 : index
    %29 = vector.load %arg8[%c0_21, %c0_22] : memref<1x32xf32, #tpu.memory_space<vmem>>, vector<1x32xf32>
    %30 = vector.broadcast %29 : vector<1x32xf32> to vector<24x32xf32>
    %31 = arith.addf %28, %30 : vector<24x32xf32>
    %cst_23 = arith.constant 0.000000e+00 : f32
    %32 = vector.broadcast %cst_23 : f32 to vector<24x32xf32>
    %33 = arith.cmpf ogt, %31, %32 : vector<24x32xf32>
    %cst_24 = arith.constant 1.000000e-01 : f32
    %34 = vector.broadcast %cst_24 : f32 to vector<24x32xf32>
    %35 = arith.mulf %34, %31 : vector<24x32xf32>
    %36 = arith.select %33, %31, %35 : vector<24x32xi1>, vector<24x32xf32>
    %37 = arith.truncf %36 : vector<24x32xf32> to vector<24x32xbf16>
    %c0_25 = arith.constant 0 : index
    %c0_26 = arith.constant 0 : index
    %38 = vector.load %arg9[%c0_25, %c0_26] : memref<32x32xbf16, #tpu.memory_space<vmem>>, vector<32x32xbf16>
    %cst_27 = arith.constant dense<0.000000e+00> : vector<24x32xf32>
    %39 = tpu.matmul %37, %38, %cst_27 {dimension_numbers = #tpu.dot_dimension_numbers<[1], [0], [0], [1], [0, 0, 1, 1], [], []>} : vector<24x32xbf16>, vector<32x32xbf16>, vector<24x32xf32> -> vector<24x32xf32>
    %c0_28 = arith.constant 0 : index
    %c0_29 = arith.constant 0 : index
    %40 = vector.load %arg10[%c0_28, %c0_29] : memref<1x32xf32, #tpu.memory_space<vmem>>, vector<1x32xf32>
    %41 = vector.broadcast %40 : vector<1x32xf32> to vector<24x32xf32>
    %42 = arith.addf %39, %41 : vector<24x32xf32>
    %43 = arith.mulf %42, %42 : vector<24x32xf32>
    %cst_30 = arith.constant dense<0.000000e+00> : vector<24xf32>
    %44 = vector.multi_reduction <add>, %43, %cst_30 [1] : vector<24x32xf32> to vector<24xf32>
    %45 = vector.shape_cast %44 : vector<24xf32> to vector<24x1xf32>
    %cst_31 = arith.constant 1.000000e-24 : f32
    %46 = vector.broadcast %cst_31 : f32 to vector<24x1xf32>
    %47 = arith.maximumf %45, %46 : vector<24x1xf32>
    %48 = math.rsqrt %47 : vector<24x1xf32>
    %49 = vector.broadcast %48 : vector<24x1xf32> to vector<24x32xf32>
    %50 = arith.mulf %42, %49 : vector<24x32xf32>
    %51 = vector.extract_strided_slice %50 {offsets = [0, 0], sizes = [8, 32], strides = [1, 1]} : vector<24x32xf32> to vector<8x32xf32>
    %c0_32 = arith.constant 0 : index
    %c0_33 = arith.constant 0 : index
    %52 = vector.load %arg11[%c0_32, %c0_33] : memref<8x32xf32, #tpu.memory_space<vmem>>, vector<8x32xf32>
    tpu.vector_store %arg11[%c0_32, %c0_33], %51 {strides = array<i32>} : memref<8x32xf32, #tpu.memory_space<vmem>>, vector<8x32xf32>,
    %53 = vector.extract_strided_slice %50 {offsets = [8, 0], sizes = [8, 32], strides = [1, 1]} : vector<24x32xf32> to vector<8x32xf32>
    %c0_34 = arith.constant 0 : index
    %c0_35 = arith.constant 0 : index
    %54 = vector.load %arg12[%c0_34, %c0_35] : memref<8x32xf32, #tpu.memory_space<vmem>>, vector<8x32xf32>
    tpu.vector_store %arg12[%c0_34, %c0_35], %53 {strides = array<i32>} : memref<8x32xf32, #tpu.memory_space<vmem>>, vector<8x32xf32>,
    %55 = vector.extract_strided_slice %50 {offsets = [16, 0], sizes = [8, 32], strides = [1, 1]} : vector<24x32xf32> to vector<8x32xf32>
    %c0_36 = arith.constant 0 : index
    %c0_37 = arith.constant 0 : index
    %56 = vector.load %arg13[%c0_36, %c0_37] : memref<8x32xf32, #tpu.memory_space<vmem>>, vector<8x32xf32>
    tpu.vector_store %arg13[%c0_36, %c0_37], %55 {strides = array<i32>} : memref<8x32xf32, #tpu.memory_space<vmem>>, vector<8x32xf32>,
    return
  }
}

</mosaic_0001>

<bundles_post_ra>
// kernel: siamese_forward.1
= control target key start
LH: loop header
LB: loop body
LE: loop exit
PB: predicated region body
PF: predicated region fallthrough
CT: control target
= control target key end

     0   :  { %19 = vsyncpa [#allocation3], 0  ;;  %vm112_vm0 = vcmask 916480   ;;  %s939_s0 = inlined_call_operand.vmem [shape: f32[8,112], index: 0, kind: input, shape index: {}]   ;;  %s940_s1 = inlined_call_operand.vmem [shape: f32[8,112], index: 1, kind: input, shape index: {}]   ;;  %s941_s2 = inlined_call_operand.vmem [shape: f32[8,112], index: 2, kind: input, shape index: {}]   ;;  %s942_s3 = inlined_call_operand.vmem [shape: bf16[112,64], index: 3, kind: input, shape index: {}]   ;;  %s943_s4 = inlined_call_operand.vmem [shape: f32[1,64], index: 4, kind: input, shape index: {}]   ;;  %s944_s5 = inlined_call_operand.vmem [shape: bf16[64,64], index: 5, kind: input, shape index: {}]   ;;  %s945_s6 = inlined_call_operand.vmem [shape: f32[1,64], index: 6, kind: input, shape index: {}]   ;;  %s946_s7 = inlined_call_operand.vmem [shape: bf16[64,32], index: 7, kind: input, shape index: {}]   ;;  %s947_s8 = inlined_call_operand.vmem [shape: f32[1,32], index: 8, kind: input, shape index: {}]   ;;  %s948_s9 = inlined_call_operand.vmem [shape: bf16[32,32], index: 9, kind: input, shape index: {}]   ;;  %s949_s10 = inlined_call_operand.vmem [shape: f32[1,32], index: 10, kind: input, shape index: {}]   ;;  %s950_s11 = inlined_call_operand.hbm [shape: f32[8,32], index: 11, kind: output, shape index: {0}]   ;;  %s951_s12 = inlined_call_operand.hbm [shape: f32[8,32], index: 12, kind: output, shape index: {1}]   ;;  %s952_s13 = inlined_call_operand.hbm [shape: f32[8,32], index: 13, kind: output, shape index: {2}]  }
   0x1   :  { %v637_v0 = vld [vmem:[%s942_s3] sm:$0xff]   ;;  %v638_v1 = vld [vmem:[%s942_s3 + $0x8] sm:$0xff]   ;;  %v639_v2 = vld [vmem:[%s942_s3 + $0x10] sm:$0xff]  }
   0x2   :  { %584 = vmatprep.subr.bf16.mxu0 %v637_v0  ;;  %v640_v3 = vld [vmem:[%s942_s3 + $0x18] sm:$0xff]   ;;  %v44_v4 = vld [vmem:[%s939_s0] sm:$0xff] }
   0x3   :  { %585 = vmatpush3.bf16.msra.mxu0 %v637_v0  ;;  %v45_v5 = vld [vmem:[%s940_s1] sm:$0xff] }
   0x4   :  { %586 = vmatprep.subr.bf16.mxu0 %v638_v1  ;;  %v47_v6 = vpack.c.bf16 %v45_v5, %v44_v4  ;;  %v644_v7 = vld [vmem:[%s944_s5] sm:$0xff]  }
   0x5   :  { %v641_v8 = vld [vmem:[%s942_s3 + $0x20] sm:$0xff]   ;;  %602 = vmatprep.subr.bf16.mxu1 %v644_v7 }
   0x6   :  { %598 = vmatprep.mubr.msk.bf16.mxu0 %vm112_vm0, %v47_v6  ;;  %603 = vmatpush3.bf16.msra.mxu1 %v644_v7 }
   0x7   :  { %587 = vmatpush3.bf16.msra.mxu0 %v638_v1 }
   0x8   :  { %588 = vmatprep.subr.bf16.mxu0 %v639_v2 }
   0xb   :  { %589 = vmatpush3.bf16.msra.mxu0 %v639_v2 }
   0xc   :  { %590 = vmatprep.subr.bf16.mxu0 %v640_v3 }
   0xf   :  { %591 = vmatpush3.bf16.msra.mxu0 %v640_v3 }
  0x10   :  { %20 = vsyncpa [#allocation5], 0  ;;  %592 = vmatprep.subr.bf16.mxu0 %v641_v8  ;;  %v642_v9 = vld [vmem:[%s942_s3 + $0x28] sm:$0xff]   ;;  %v643_v10 = vld [vmem:[%s942_s3 + $0x30] sm:$0xff]   ;;  %vm217_vm4 = vcmask 523264   ;;  %vm410_vm11 = vcmask 261120  }
  0x11   :  { %v46_v11 = vld [vmem:[%s941_s2] sm:$0xff]  ;;  %v645_v13 = vld [vmem:[%s944_s5 + $0x8] sm:$0xff]   ;;  %v646_v14 = vld [vmem:[%s944_s5 + $0x10] sm:$0xff]   ;;  %s731_s28 = smov [#allocation6]   ;;  %s732_s30 = smov [#allocation2]  }
  0x12   :  { %v48_v12 = vpack.c.bf16 %v46_v11, %v46_v11  ;;  %604 = vmatprep.subr.bf16.mxu1 %v645_v13  ;;  %v647_v15 = vld [vmem:[%s944_s5 + $0x18] sm:$0xff]   ;;  %v648_v16 = vld [vmem:[%s946_s7] sm:$0xff]   ;;  %v649_v33 = vld [vmem:[%s946_s7 + $0x8] sm:$0xff]   ;;  %s515_s29 = sshll.u32 %s731_s28, 4  ;;  %s495_s14 = sshll.u32 %s732_s30, 4  ;;  %s887_s29 = int_to_ptr.vmem [resolvable:$true] %s515_s29  ;;  %s890_s14 = int_to_ptr.vmem [resolvable:$true] %s495_s14 }
  0x13   :  { %593 = vmatpush3.bf16.msra.mxu0 %v641_v8  ;;  %605 = vmatpush3.bf16.msra.mxu1 %v645_v13  ;;  %v530_v17 = vld [vmem:[%s943_s4] ss:$0 sm:$0xff]  ;;  %v650_v34 = vld [vmem:[%s946_s7 + $0x10] sm:$0xff]   ;;  %v651_v35 = vld [vmem:[%s946_s7 + $0x18] sm:$0xff]  }
  0x14   :  { %594 = vmatprep.subr.bf16.mxu0 %v642_v9  ;;  %606 = vmatprep.subr.bf16.mxu1 %v646_v14  ;;  %v540_v36 = vld [vmem:[%s945_s6] ss:$0 sm:$0xff]  ;;  %v653_v53 = vld [vmem:[%s948_s9 + $0x8] sm:$0xff]  }
  0x15   :  { %v652_v52 = vld [vmem:[%s948_s9] sm:$0xff]  }
  0x16   :  { %v547_v54 = vld [vmem:[%s947_s8] ss:$0 sm:$0xff] }
  0x17   :  { %595 = vmatpush3.bf16.msra.mxu0 %v642_v9  ;;  %607 = vmatpush3.bf16.msra.mxu1 %v646_v14  ;;  %v554_v6 = vld [vmem:[%s949_s10] ss:$0 sm:$0xff]  ;;  %s730_s10 = smov [#allocation4]  }
  0x18   :  { %596 = vmatprep.subr.bf16.mxu0 %v643_v10  ;;  %608 = vmatprep.subr.bf16.mxu1 %v647_v15  ;;  %s505_s27 = sshll.u32 %s730_s10, 4  ;;  %s506_s27 = int_to_ptr.vmem [resolvable:$true] %s505_s27 }
  0x19   :  { %s660_s3 = scalar_lea.vmem %s506_s27, 128  ;;  %p665_p1 = scmp.lt.s32.totalorder %s506_s27, %s506_s27 }
  0x1a   :  { %p661_p0 = scmp.ne.s32.totalorder %s506_s27, %s660_s3  ;;  %p666_p2 = scmp.lt.s32.totalorder %s660_s3, %s660_s3 }
  0x1b   :  { %597 = vmatpush3.bf16.msra.mxu0 %v643_v10  ;;  %609 = vmatpush3.bf16.msra.mxu1 %v647_v15 }
  0x1c   :  { %614 = vmatprep.subr.bf16.mxu1 %v648_v16  ;;  %626 = vmatprep.subr.bf16.mxu0 %v652_v52  ;;  %p667_p3 = por %p666_p2, %p665_p1 }
  0x1e   :  { %599 = vmatmul.mubr.msk.bf16.vlgmr.msra.gmra.mrb[0].mxu0 %vm112_vm0, %v48_v12  ;;  %p668_p4 = pnand %p667_p3, %p661_p0 }
  0x1f   :  { %627 = vmatpush3.bf16.msra.mxu0 %v652_v52 }
  0x20   :  { %628 = vmatprep.subr.bf16.mxu0 %v653_v53 }
  0x23   :  { %629 = vmatpush3.bf16.msra.mxu0 %v653_v53 }
  0xf1   :  { %v600_v18 = vpop.f32.mrb[0].mxu0 }
  0xf2   :  { %v162_v19 = vadd.f32 %v600_v18, %v530_v17  ;;  %v153_v20 = vpop.f32.mrb[1].mxu0 }
  0xf3   :  { %v154_v21 = vadd.f32 %v530_v17, %v153_v20  ;;  %v601_v22 = vpop.f32.mrb[2].mxu0 }
  0xf4   :  { %v172_v23 = vmul.f32 0.1, %v162_v19  ;;  %v156_v24 = vpop.f32.mrb[3].mxu0  ;;  %vm169_vm1 = vcmp.gt.f32.partialorder %v162_v19, 0.0 }
  0xf5   :  { %v170_v25 = vmul.f32 0.1, %v154_v21  ;;  %v157_v26 = vadd.f32 %v530_v17, %v156_v24  ;;  %vm167_vm2 = vcmp.gt.f32.partialorder %v154_v21, 0.0 }
  0xf6   :  { %v175_v28 = vsel %vm169_vm1, %v162_v19, %v172_v23 }
  0xf7   :  { %v171_v27 = vmul.f32 0.1, %v157_v26  ;;  %vm168_vm3 = vcmp.gt.f32.partialorder %v157_v26, 0.0  ;;  %v173_v29 = vsel %vm167_vm2, %v154_v21, %v170_v25  ;;  %v177_v32 = vpack.c.bf16 %v175_v28, %v175_v28 }
  0xf9   :  { %v174_v30 = vsel %vm168_vm3, %v157_v26, %v171_v27 }
  0xfa   :  { %v176_v31 = vpack.c.bf16 %v174_v30, %v173_v29 }
  0xfc   :  { %610 = vmatprep.mubr.msk.bf16.mxu1 %vm217_vm4, %v176_v31 }
  0xfd   :  { %611 = vmatmul.mubr.msk.bf16.vlgmr.msra.gmra.mrb[0].mxu1 %vm217_vm4, %v177_v32 }
  0xfe   :  { %615 = vmatpush3.bf16.msra.mxu1 %v648_v16 }
  0xff   :  { %616 = vmatprep.subr.bf16.mxu1 %v649_v33 }
 0x102   :  { %617 = vmatpush3.bf16.msra.mxu1 %v649_v33 }
 0x103   :  { %618 = vmatprep.subr.bf16.mxu1 %v650_v34 }
 0x106   :  { %619 = vmatpush3.bf16.msra.mxu1 %v650_v34 }
 0x107   :  { %620 = vmatprep.subr.bf16.mxu1 %v651_v35 }
 0x10a   :  { %621 = vmatpush3.bf16.msra.mxu1 %v651_v35 }
 0x1d0   :  { %v612_v37 = vpop.f32.mrb[0].mxu1 }
 0x1d1   :  { %v267_v38 = vadd.f32 %v612_v37, %v540_v36  ;;  %v258_v39 = vpop.f32.mrb[1].mxu1 }
 0x1d2   :  { %v259_v40 = vadd.f32 %v540_v36, %v258_v39  ;;  %v613_v41 = vpop.f32.mrb[2].mxu1 }
 0x1d3   :  { %v277_v42 = vmul.f32 0.1, %v267_v38  ;;  %v261_v43 = vpop.f32.mrb[3].mxu1  ;;  %vm274_vm5 = vcmp.gt.f32.partialorder %v267_v38, 0.0 }
 0x1d4   :  { %v275_v44 = vmul.f32 0.1, %v259_v40  ;;  %v262_v45 = vadd.f32 %v540_v36, %v261_v43  ;;  %vm272_vm6 = vcmp.gt.f32.partialorder %v259_v40, 0.0 }
 0x1d5   :  { %v280_v47 = vsel %vm274_vm5, %v267_v38, %v277_v42 }
 0x1d6   :  { %vm273_vm7 = vcmp.gt.f32.partialorder %v262_v45, 0.0  ;;  %v276_v46 = vmul.f32 0.1, %v262_v45  ;;  %v278_v48 = vsel %vm272_vm6, %v259_v40, %v275_v44  ;;  %v282_v51 = vpack.c.bf16 %v280_v47, %v280_v47 }
 0x1d8   :  { %v279_v49 = vsel %vm273_vm7, %v262_v45, %v276_v46 }
 0x1d9   :  { %v281_v50 = vpack.c.bf16 %v279_v49, %v278_v48 }
 0x1db   :  { %622 = vmatprep.mubr.msk.bf16.mxu1 %vm217_vm4, %v281_v50 }
 0x1dc   :  { %623 = vmatmul.mubr.msk.bf16.vlgmr.msra.gmra.mrb[4].mxu1 %vm217_vm4, %v282_v51 }
 0x2af   :  { %v624_v55 = vpop.f32.mrb[4].mxu1 }
 0x2b0   :  { %v371_v56 = vadd.f32 %v624_v55, %v547_v54  ;;  %v362_v57 = vpop.f32.mrb[5].mxu1 }
 0x2b1   :  { %v363_v58 = vadd.f32 %v547_v54, %v362_v57  ;;  %v625_v59 = vpop.f32.mrb[6].mxu1 }
 0x2b2   :  { %v381_v60 = vmul.f32 0.1, %v371_v56  ;;  %v365_v61 = vpop.f32.mrb[7].mxu1  ;;  %vm378_vm8 = vcmp.gt.f32.partialorder %v371_v56, 0.0 }
 0x2b3   :  { %v379_v62 = vmul.f32 0.1, %v363_v58  ;;  %v366_v63 = vadd.f32 %v547_v54, %v365_v61  ;;  %vm376_vm9 = vcmp.gt.f32.partialorder %v363_v58, 0.0 }
 0x2b4   :  { %v384_v1 = vsel %vm378_vm8, %v371_v56, %v381_v60 }
 0x2b5   :  { %vm377_vm10 = vcmp.gt.f32.partialorder %v366_v63, 0.0  ;;  %v380_v0 = vmul.f32 0.1, %v366_v63  ;;  %v382_v2 = vsel %vm376_vm9, %v363_v58, %v379_v62  ;;  %v386_v5 = vpack.c.bf16 %v384_v1, %v384_v1 }
 0x2b7   :  { %v383_v3 = vsel %vm377_vm10, %v366_v63, %v380_v0 }
 0x2b8   :  { %v385_v4 = vpack.c.bf16 %v383_v3, %v382_v2 }
 0x2ba   :  { %630 = vmatprep.mubr.msk.bf16.mxu0 %vm410_vm11, %v385_v4 }
 0x2bb   :  { %631 = vmatmul.mubr.msk.bf16.vlgmr.msra.gmra.mrb[4].mxu0 %vm410_vm11, %v386_v5 }
 0x38e   :  { %v632_v7 = vpop.f32.mrb[4].mxu0 }
 0x38f   :  { %v460_v8 = vadd.f32 %v632_v7, %v554_v6  ;;  %v451_v9 = vpop.f32.mrb[5].mxu0 }
 0x390   :  { %v633_v10 = vpop.f32.mrb[6].mxu0  ;;  %v452_v13 = vadd.f32 %v554_v6, %v451_v9 }
 0x391   :  { %v454_v11 = vpop.f32.mrb[7].mxu0  ;;  %v467_v12 = vmul.f32 %v460_v8, %v460_v8 }
 0x392   :  { %v455_v14 = vadd.f32 %v554_v6, %v454_v11  ;;  %v465_v18 = vmul.f32 %v452_v13, %v452_v13 }
 0x393   :  { %v474_v15 = vsel %vm410_vm11, %v467_v12, 0.0 }
 0x394   :  { %475 = vadd.xlane.f32.xlu1 %v474_v15  ;;  %v466_v16 = vmul.f32 %v455_v14, %v455_v14  ;;  %v468_v19 = vsel %vm410_vm11, %v465_v18, 0.0 }
 0x396   :  { %v471_v17 = vsel %vm410_vm11, %v466_v16, 0.0 }
 0x397   :  { %472 = vadd.xlane.f32.xlu0 %v471_v17 }
 0x39b   :  { %469 = vadd.xlane.f32.xlu0 %v468_v19 }
 0x421   :  { %v476_v20 = vpop.xlane.xlu1 %475 }
 0x422   :  { %v479_v21 = vmax.f32 %v476_v20, 1e-24 }
 0x424   :  { %654 = vrsqrt.f32 %v479_v21  ;;  %v473_v22 = vpop.xlane.xlu0 %472 }
 0x425   :  { %v478_v23 = vmax.f32 %v473_v22, 1e-24 }
 0x427   :  { %656 = vrsqrt.f32 %v478_v23 }
 0x428   :  { %v470_v24 = vpop.xlane.xlu0 %469 }
 0x429   :  { %v477_v25 = vmax.f32 %v470_v24, 1e-24 }
 0x42b   :  { %658 = vrsqrt.f32 %v477_v25 }
 0x42e   :  { %v655_v26 = vpop.eup %654 }
 0x42f   :  { %v485_v27 = vmul.f32 %v655_v26, %v460_v8 }
 0x431   :  { %v657_v28 = vpop.eup %656  ;;  %488 = vst.msk [vmem:[#allocation6] sm:$0xff] %vm410_vm11, %v485_v27 }
 0x432   :  { %v484_v29 = vmul.f32 %v657_v28, %v455_v14 }
 0x434   :  { %487 = vst.msk [vmem:[#allocation4] sm:$0xff] %vm410_vm11, %v484_v29 }
 0x435   :  { %v659_v30 = vpop.eup %658 }
 0x436   :  { %671 = shalt.err (!%p668_p4)
}
 0x437   :  { %s672_s16 = scalar_lea.hbm %s951_s12, 128 }
 0x438   :  { %p673_p5 = scmp.ne.s32.totalorder %s951_s12, %s672_s16  ;;  %p676_p6 = scmp.lt.u32.totalorder %s672_s16, %s951_s12 }
 0x43a   :  { %p678_p7 = pnand %p676_p6, %p673_p5 }
 0x43c   :  { %681 = shalt.err (!%p678_p7)
}
 0x43d   :  { %508 = dma.vmem_to_hbm [thread:$0]  %s506_s27, 128, %s951_s12, [#allocation5]   ;;  %v483_v31 = vmul.f32 %v659_v30, %v452_v13 }
 0x43e   :  { %s682_s21 = scalar_lea.vmem %s887_s29, 128  ;;  %p687_p9 = scmp.lt.s32.totalorder %s887_s29, %s887_s29 }
 0x43f   :  { %p683_p8 = scmp.ne.s32.totalorder %s887_s29, %s682_s21  ;;  %p688_p10 = scmp.lt.s32.totalorder %s682_s21, %s682_s21 }
 0x441   :  { %p689_p11 = por %p688_p10, %p687_p9 }
 0x443   :  { %p690_p12 = pnand %p689_p11, %p683_p8 }
 0x445   :  { %693 = shalt.err (!%p690_p12)
}
 0x446   :  { %s694_s0 = scalar_lea.hbm %s952_s13, 128 }
 0x447   :  { %p695_p13 = scmp.ne.s32.totalorder %s952_s13, %s694_s0  ;;  %p698_p0 = scmp.lt.u32.totalorder %s694_s0, %s952_s13 }
 0x449   :  { %p700_p1 = pnand %p698_p0, %p695_p13 }
 0x44b   :  { %703 = shalt.err (!%p700_p1)
}
 0x44c   :  { %518 = dma.vmem_to_hbm [thread:$0]  %s887_s29, 128, %s952_s13, [#allocation5]   ;;  %486 = vst.msk [vmem:[#allocation2] sm:$0xff] %vm410_vm11, %v483_v31 }
 0x44d   :  { %s704_s26 = scalar_lea.vmem %s890_s14, 128  ;;  %p709_p3 = scmp.lt.s32.totalorder %s890_s14, %s890_s14 }
 0x44e   :  { %p705_p2 = scmp.ne.s32.totalorder %s890_s14, %s704_s26  ;;  %p710_p4 = scmp.lt.s32.totalorder %s704_s26, %s704_s26 }
 0x450   :  { %p711_p5 = por %p710_p4, %p709_p3 }
 0x452   :  { %p712_p6 = pnand %p711_p5, %p705_p2 }
 0x454   :  { %715 = shalt.err (!%p712_p6)
}
 0x455   :  { %s716_s10 = scalar_lea.hbm %s950_s11, 128 }
 0x456   :  { %p717_p7 = scmp.ne.s32.totalorder %s950_s11, %s716_s10  ;;  %p720_p8 = scmp.lt.u32.totalorder %s716_s10, %s950_s11 }
 0x458   :  { %p722_p9 = pnand %p720_p8, %p717_p7 }
 0x45a   :  { %725 = shalt.err (!%p722_p9)
}
 0x45b   :  { %498 = dma.vmem_to_hbm [thread:$0]  %s890_s14, 128, %s950_s11, [#allocation3]  }
 0x45c   :  { %726 = dma.done.wait [#allocation3], 128  }
 0x45d   :  { %727 = vsyncadd [#allocation3], 4294967168 }
 0x45e   :  { %728 = dma.done.wait [#allocation5], 256  }
 0x45f   :  { %729 = vsyncadd [#allocation5], 4294967040 }
 0x460   :  { %528 = vsyncpa [#allocation3], 1 }
 0x461   :  { %529 = vsyncpa [#allocation5], 1 }

</bundles_post_ra>
